<compile_context>
chip_gen: v7x
topology: tpu7x:2x2x1
jax: 0.10.0
libtpu: 0.0.40
codegen_flags: <defaults>
</compile_context>

<pallas_src>
import functools
import math

import jax
import jax.numpy as jnp
from jax import lax
from jax.experimental import pallas as pl
from jax.experimental.pallas import tpu as pltpu


def _round_up(x: int, m: int) -> int:
    return (x + m - 1) // m * m


def _cdiv(a: int, b: int) -> int:
    return (a + b - 1) // b


# ----------------------------------------------------------------------------- kernel

def _spec_rgs_head_kernel(x_ref, w1_ref, b1_ref, gamma_ref, beta_ref,
                          w2_ref, b2_ref, o_ref, *, n_sub, mxu_bf16):
    """Whole head (Linear -> GELU -> LayerNorm -> Linear) for one row-tile.

    The row tile is processed as `n_sub` independent sub-tiles so the MXU work of one
    sub-tile can overlap the VPU/EUP (GELU + LayerNorm) work of the previous one.
    """
    # Grid-invariant row params (already f32 from the wrapper).
    b1 = b1_ref[...]        # (1, d_model)
    gamma = gamma_ref[...]  # (1, d_model)
    beta = beta_ref[...]    # (1, d_model)
    b2 = b2_ref[...]        # (1, n_freqs)
    w1 = w1_ref[...]        # (d_model, d_model)   bf16 when mxu_bf16
    w2 = w2_ref[...]        # (d_model, n_freqs)   bf16 when mxu_bf16

    tile_m = x_ref.shape[0]
    d_model = w1_ref.shape[0]
    sub_m = tile_m // n_sub

    inv_sqrt2 = jnp.float32(1.0 / math.sqrt(2.0))
    d_inv = jnp.float32(1.0 / d_model)
    eps = jnp.float32(1e-5)

    for s in range(n_sub):                      # statically unrolled: independent chains
        rows = pl.ds(s * sub_m, sub_m)

        # ---- Linear 1 (MXU, f32 accumulation) ----
        x = x_ref[rows, :]
        if mxu_bf16 and x.dtype != jnp.bfloat16:
            x = x.astype(jnp.bfloat16)
        h = jnp.dot(x, w1, preferred_element_type=jnp.float32) + b1   # (sub_m, d_model) f32

        # ---- GELU exact (approximate='none'); erf on the EUP ----
        h = 0.5 * h * (1.0 + lax.erf(h * inv_sqrt2))

        # ---- LayerNorm over last dim, two-pass variance (matches PyTorch) ----
        mu = jnp.sum(h, axis=-1, keepdims=True) * d_inv
        c = h - mu
        var = jnp.sum(c * c, axis=-1, keepdims=True) * d_inv
        hn = c * lax.rsqrt(var + eps)
        hn = hn * gamma + beta

        # ---- Linear 2 (MXU, f32 accumulation) ----
        out = jnp.dot(hn.astype(w2.dtype), w2, preferred_element_type=jnp.float32) + b2
        o_ref[rows, :] = out.astype(o_ref.dtype)


# ----------------------------------------------------------------------- pallas_call

@functools.partial(
    jax.jit,
    static_argnames=("tile_m", "n_sub", "mxu_bf16", "single_buffer", "vmem_limit"))
def _spec_rgs_head_jit(emb, w1, b1, gamma, beta, w2, b2, *,
                       tile_m, n_sub, mxu_bf16, single_buffer, vmem_limit):
    B, T, d_model = emb.shape
    n_freqs = w2.shape[1]
    M = B * T

    x = emb.reshape(M, d_model)

    # Weights to bf16 (once per call) when the fast MXU path is requested.
    w_dtype = jnp.bfloat16 if mxu_bf16 else w1.dtype
    w1c = w1.astype(w_dtype)
    w2c = w2.astype(w_dtype)
    b1_2d = b1.reshape(1, d_model).astype(jnp.float32)
    gamma_2d = gamma.reshape(1, d_model).astype(jnp.float32)
    beta_2d = beta.reshape(1, d_model).astype(jnp.float32)
    b2_2d = b2.reshape(1, n_freqs).astype(jnp.float32)

    grid = (_cdiv(M, tile_m),)   # ragged last block is masked by Pallas (no wrapper pad)

    # Grid-invariant operands: constant index_map; single-buffer them if supported.
    const_kw = dict(pipeline_mode=pl.Buffered(1)) if single_buffer else {}

    kernel = functools.partial(_spec_rgs_head_kernel, n_sub=n_sub, mxu_bf16=mxu_bf16)

    cost = pl.CostEstimate(
        flops=2 * M * d_model * (d_model + n_freqs),
        transcendentals=M * d_model,
        bytes_accessed=(x.size * x.dtype.itemsize
                        + w1c.size * w1c.dtype.itemsize
                        + w2c.size * w2c.dtype.itemsize
                        + (3 * d_model + n_freqs) * 4
                        + M * n_freqs * emb.dtype.itemsize),
    )

    out = pl.pallas_call(
        kernel,
        out_shape=jax.ShapeDtypeStruct((M, n_freqs), emb.dtype),
        grid_spec=pltpu.PrefetchScalarGridSpec(
            num_scalar_prefetch=0,
            grid=grid,
            in_specs=[
                pl.BlockSpec((tile_m, d_model), lambda i: (i, 0)),                 # x rows
                pl.BlockSpec((d_model, d_model), lambda i: (0, 0), **const_kw),    # W1
                pl.BlockSpec((1, d_model), lambda i: (0, 0), **const_kw),          # b1
                pl.BlockSpec((1, d_model), lambda i: (0, 0), **const_kw),          # gamma
                pl.BlockSpec((1, d_model), lambda i: (0, 0), **const_kw),          # beta
                pl.BlockSpec((d_model, n_freqs), lambda i: (0, 0), **const_kw),    # W2
                pl.BlockSpec((1, n_freqs), lambda i: (0, 0), **const_kw),          # b2
            ],
            out_specs=pl.BlockSpec((tile_m, n_freqs), lambda i: (i, 0)),
        ),
        compiler_params=pltpu.CompilerParams(
            dimension_semantics=("parallel",),
            vmem_limit_bytes=vmem_limit,
        ),
        cost_estimate=cost,
    )(x, w1c, b1_2d, gamma_2d, beta_2d, w2c, b2_2d)

    return out.reshape(B, T, n_freqs)


# --------------------------------------------------------------------- configuration

_SINGLE_BUFFER_OK = None


def _probe_single_buffer_weights() -> bool:
    """Tiny dedicated probe: does this JAX/Mosaic build accept (and correctly run)
    pipeline_mode=pl.Buffered(1) on a grid-invariant input?  Probed once, cached."""
    global _SINGLE_BUFFER_OK
    if _SINGLE_BUFFER_OK is not None:
        return _SINGLE_BUFFER_OK

    def _copy(x_ref, o_ref):
        o_ref[...] = x_ref[...]

    try:
        x = jnp.arange(8 * 128, dtype=jnp.float32).reshape(8, 128)
        fn = pl.pallas_call(
            _copy,
            out_shape=jax.ShapeDtypeStruct((16, 128), jnp.float32),
            grid=(2,),
            in_specs=[pl.BlockSpec((8, 128), lambda i: (0, 0),
                                   pipeline_mode=pl.Buffered(1))],
            out_specs=pl.BlockSpec((8, 128), lambda i: (i, 0)),
        )
        res = jax.block_until_ready(fn(x))
        _SINGLE_BUFFER_OK = bool(jnp.all(res[:8] == x)) and bool(jnp.all(res[8:] == x))
    except Exception:
        # This build rejects buffer_count=1 -> fall back to default double buffering.
        _SINGLE_BUFFER_OK = False
    return _SINGLE_BUFFER_OK


def _select_config(M, d_model, n_freqs, in_dtype, w_itemsize, out_itemsize,
                   mxu_bf16, single_buffer):
    """Generation-aware row-tile / VMEM-limit selection."""
    try:
        vmem_cap = int(pltpu.get_tpu_info().vmem_capacity_bytes)
    except Exception:
        vmem_cap = 64 << 20                      # conservative (v7x-per-TC) fallback
    budget = max(vmem_cap - (16 << 20), 24 << 20)  # leave headroom for compiler scratch

    in_bytes = jnp.dtype(in_dtype).itemsize
    row_gran = 8 * max(1, 4 // in_bytes)         # sublane granularity (8 f32, 16 bf16)

    # Bigger row tiles on 128 MiB chips (v5e/v6e); smaller default on 64 MiB (v7x).
    if vmem_cap >= (96 << 20):
        target = 1024 if in_bytes <= 2 else 512
    else:
        target = 512 if in_bytes <= 2 else 256

    tile_m = max(row_gran, min(_round_up(target, row_gran), _round_up(M, row_gran)))

    # Dual-TensorCore chips (v7x): keep >= 2 grid steps per core so each core still
    # has DMA pipelining.  Single-TC chips: never force a split (pure overhead).
    n_cores_guess = 2 if vmem_cap <= (80 << 20) else 1
    if n_cores_guess == 2 and _round_up(M, row_gran) >= 4 * row_gran:
        tile_m = min(tile_m, _round_up(_cdiv(M, 2 * n_cores_guess), row_gran))

    w_bytes = 2 if mxu_bf16 else w_itemsize
    w_bufs = 1 if single_buffer else 2

    def resident(tm):
        weights = w_bufs * (d_model * d_model * w_bytes
                            + d_model * n_freqs * w_bytes
                            + (3 * d_model + n_freqs) * 4)
        tiles = 2 * tm * d_model * in_bytes + 2 * tm * n_freqs * out_itemsize
        temps = 4 * tm * d_model * 4             # f32 intermediates, both sub-tiles live
        return weights + tiles + temps + (2 << 20)

    # Shrink the row tile (never the weights) until the resident set fits the budget.
    while tile_m > row_gran and resident(tile_m) > budget:
        tile_m = max(row_gran, _round_up(tile_m // 2, row_gran))
    # TODO(synk): if bf16 W1 alone cannot fit a v7x TC's VMEM (d_model >~ 5-6k), add a
    # K-tiled reduction grid axis ("arbitrary") with an f32 accumulator instead of a
    # fully-resident W1.

    n_sub = 2 if (tile_m >= 2 * row_gran and tile_m % (2 * row_gran) == 0) else 1
    vmem_limit = int(min(max(resident(tile_m) + (8 << 20), 32 << 20), budget))
    return tile_m, n_sub, vmem_limit


def spec_rgs_head(emb, w1, b1, gamma, beta, w2, b2, *, mxu_bf16=True):
    """emb: (B, T, d_model) -> (B, T, n_freqs).  Linear weights stored as (in, out).

    mxu_bf16: feed the MXU bf16 operands (f32 accumulation, f32 GELU/LayerNorm math).
    Set False for bit-closest-to-PyTorch-f32 results.
    """
    B, T, d_model = emb.shape
    n_freqs = w2.shape[1]
    M = B * T

    single_buffer = _probe_single_buffer_weights()
    tile_m, n_sub, vmem_limit = _select_config(
        M, d_model, n_freqs, emb.dtype,
        jnp.dtype(w1.dtype).itemsize, jnp.dtype(emb.dtype).itemsize,
        mxu_bf16, single_buffer)

    return _spec_rgs_head_jit(
        emb, w1, b1, gamma, beta, w2, b2,
        tile_m=tile_m, n_sub=n_sub, mxu_bf16=mxu_bf16,
        single_buffer=single_buffer, vmem_limit=vmem_limit)


# -------------------------------------------------------------------------- reference

def _trunc_normal(key, shape, std=0.02, dtype=jnp.float32):
    # nn.init.trunc_normal_(mean=0, std=0.02) truncates at +/- 2 (in units of std).
    return jax.random.truncated_normal(key, -2.0, 2.0, shape, dtype) * std


def _reference(emb, w1, b1, gamma, beta, w2, b2):
    h = emb @ w1 + b1
    h = 0.5 * h * (1.0 + lax.erf(h / jnp.sqrt(2.0)))
    mu = jnp.mean(h, axis=-1, keepdims=True)
    var = jnp.mean(jnp.square(h - mu), axis=-1, keepdims=True)
    hn = (h - mu) * lax.rsqrt(var + 1e-5)
    hn = hn * gamma + beta
    return hn @ w2 + b2


if __name__ == "__main__":
    # Small shapes consistent with the module's forward contract.
    batch_size, seq_len, d_model, n_freqs = 2, 8, 32, 16

    key = jax.random.PRNGKey(0)
    k_emb, k_w1, k_w2 = jax.random.split(key, 3)

    emb = jax.random.normal(k_emb, (batch_size, seq_len, d_model), jnp.float32)

    # Deterministic weight init matching _init_weight():
    #   Linear weights: trunc_normal(std=0.02); biases: 0.
    #   LayerNorm: gamma=1, beta=0 (PyTorch default for elementwise_affine=True).
    w1 = _trunc_normal(k_w1, (d_model, d_model))      # stored as (in, out)
    b1 = jnp.zeros((d_model,), jnp.float32)
    gamma = jnp.ones((d_model,), jnp.float32)
    beta = jnp.zeros((d_model,), jnp.float32)
    w2 = _trunc_normal(k_w2, (d_model, n_freqs))      # stored as (in, out)
    b2 = jnp.zeros((n_freqs,), jnp.float32)

    ref = _reference(emb, w1, b1, gamma, beta, w2, b2)

    # Full-precision MXU path: matches the f32 PyTorch module closely.
    out_f32 = jax.block_until_ready(
        spec_rgs_head(emb, w1, b1, gamma, beta, w2, b2, mxu_bf16=False))
    assert out_f32.shape == (batch_size, seq_len, n_freqs)
    assert jnp.allclose(out_f32, ref, atol=1e-4, rtol=1e-4), "f32 path mismatch vs reference"

    # bf16-MXU fast path (default): small, expected deviation from the f32 reference.
    out_bf16 = jax.block_until_ready(
        spec_rgs_head(emb, w1, b1, gamma, beta, w2, b2, mxu_bf16=True))
    assert out_bf16.shape == (batch_size, seq_len, n_freqs)
    assert jnp.allclose(out_bf16, ref, atol=2e-2, rtol=2e-2), "bf16 path mismatch vs reference"

    print("KERNEL_OK")
</pallas_src>

<mosaic_0001>
module attributes {stable_mosaic.version = 11 : i64} {
  func.func @_copy(%arg0: i32, %arg1: memref<8x128xf32, #tpu.memory_space<vmem>>, %arg2: memref<8x128xf32, #tpu.memory_space<vmem>>) attributes {dimension_semantics = [#tpu.dimension_semantics<arbitrary>], iteration_bounds = array<i64: 2>, scalar_prefetch = 0 : i64, scratch_operands = 0 : i64, tpu.core_type = #tpu.core_type<tc>, window_params = [{pipeline_mode = #tpu.pipeline_mode<synchronous>, transform_indices = @transform_0, window_bounds = array<i64: 8, 128>}, {transform_indices = @transform_1, window_bounds = array<i64: 8, 128>}]} {
    %c0 = arith.constant 0 : index
    %c0_0 = arith.constant 0 : index
    %0 = vector.load %arg1[%c0, %c0_0] : memref<8x128xf32, #tpu.memory_space<vmem>>, vector<8x128xf32>
    %c0_1 = arith.constant 0 : index
    %c0_2 = arith.constant 0 : index
    %1 = vector.load %arg2[%c0_1, %c0_2] : memref<8x128xf32, #tpu.memory_space<vmem>>, vector<8x128xf32>
    tpu.vector_store %arg2[%c0_1, %c0_2], %0 {strides = array<i32>} : memref<8x128xf32, #tpu.memory_space<vmem>>, vector<8x128xf32>,
    return
  }
  func.func @transform_0(%arg0: i32) -> (i32, i32) {
    %c0_i32 = arith.constant 0 : i32
    %c0_i32_0 = arith.constant 0 : i32
    %c0_i32_1 = arith.constant 0 : i32
    return %c0_i32, %c0_i32_0 : i32, i32
  }
  func.func @transform_1(%arg0: i32) -> (i32, i32) {
    %c0_i32 = arith.constant 0 : i32
    %c0_i32_0 = arith.constant 0 : i32
    return %arg0, %c0_i32 : i32, i32
  }
}

module attributes {stable_mosaic.version = 11 : i64} {
  func.func @_spec_rgs_head_kernel(%arg0: i32, %arg1: memref<16x32xf32, #tpu.memory_space<vmem>>, %arg2: memref<32x32xf32, #tpu.memory_space<vmem>>, %arg3: memref<1x32xf32, #tpu.memory_space<vmem>>, %arg4: memref<1x32xf32, #tpu.memory_space<vmem>>, %arg5: memref<1x32xf32, #tpu.memory_space<vmem>>, %arg6: memref<32x16xf32, #tpu.memory_space<vmem>>, %arg7: memref<1x16xf32, #tpu.memory_space<vmem>>, %arg8: memref<16x16xf32, #tpu.memory_space<vmem>>) attributes {dimension_semantics = [#tpu.dimension_semantics<parallel>], iteration_bounds = array<i64: 1>, scalar_prefetch = 0 : i64, scratch_operands = 0 : i64, tpu.core_type = #tpu.core_type<tc>, window_params = [{transform_indices = @transform_0, window_bounds = array<i64: 16, 32>}, {pipeline_mode = #tpu.pipeline_mode<synchronous>, transform_indices = @transform_1, window_bounds = array<i64: 32, 32>}, {pipeline_mode = #tpu.pipeline_mode<synchronous>, transform_indices = @transform_2, window_bounds = array<i64: 1, 32>}, {pipeline_mode = #tpu.pipeline_mode<synchronous>, transform_indices = @transform_3, window_bounds = array<i64: 1, 32>}, {pipeline_mode = #tpu.pipeline_mode<synchronous>, transform_indices = @transform_4, window_bounds = array<i64: 1, 32>}, {pipeline_mode = #tpu.pipeline_mode<synchronous>, transform_indices = @transform_5, window_bounds = array<i64: 32, 16>}, {pipeline_mode = #tpu.pipeline_mode<synchronous>, transform_indices = @transform_6, window_bounds = array<i64: 1, 16>}, {transform_indices = @transform_7, window_bounds = array<i64: 16, 16>}]} {
    %c0 = arith.constant 0 : index
    %c0_0 = arith.constant 0 : index
    %0 = vector.load %arg3[%c0, %c0_0] : memref<1x32xf32, #tpu.memory_space<vmem>>, vector<1x32xf32>
    %c0_1 = arith.constant 0 : index
    %c0_2 = arith.constant 0 : index
    %1 = vector.load %arg4[%c0_1, %c0_2] : memref<1x32xf32, #tpu.memory_space<vmem>>, vector<1x32xf32>
    %c0_3 = arith.constant 0 : index
    %c0_4 = arith.constant 0 : index
    %2 = vector.load %arg5[%c0_3, %c0_4] : memref<1x32xf32, #tpu.memory_space<vmem>>, vector<1x32xf32>
    %c0_5 = arith.constant 0 : index
    %c0_6 = arith.constant 0 : index
    %3 = vector.load %arg7[%c0_5, %c0_6] : memref<1x16xf32, #tpu.memory_space<vmem>>, vector<1x16xf32>
    %c0_7 = arith.constant 0 : index
    %c0_8 = arith.constant 0 : index
    %4 = vector.load %arg2[%c0_7, %c0_8] : memref<32x32xf32, #tpu.memory_space<vmem>>, vector<32x32xf32>
    %c0_9 = arith.constant 0 : index
    %c0_10 = arith.constant 0 : index
    %5 = vector.load %arg6[%c0_9, %c0_10] : memref<32x16xf32, #tpu.memory_space<vmem>>, vector<32x16xf32>
    %c0_11 = arith.constant 0 : index
    %c0_12 = arith.constant 0 : index
    %6 = vector.load %arg1[%c0_11, %c0_12] : memref<16x32xf32, #tpu.memory_space<vmem>>, vector<8x32xf32>
    %cst = arith.constant dense<0.000000e+00> : vector<8x32xf32>
    %7 = tpu.matmul %6, %4, %cst {dimension_numbers = #tpu.dot_dimension_numbers<[1], [0], [0], [1], [0, 0, 1, 1], [], []>} : vector<8x32xf32>, vector<32x32xf32>, vector<8x32xf32> -> vector<8x32xf32>
    %8 = vector.broadcast %0 : vector<1x32xf32> to vector<8x32xf32>
    %9 = arith.addf %7, %8 : vector<8x32xf32>
    %cst_13 = arith.constant 5.000000e-01 : f32
    %10 = vector.broadcast %cst_13 : f32 to vector<8x32xf32>
    %11 = arith.mulf %10, %9 : vector<8x32xf32>
    %cst_14 = arith.constant 0.707106769 : f32
    %12 = vector.broadcast %cst_14 : f32 to vector<8x32xf32>
    %13 = arith.mulf %9, %12 : vector<8x32xf32>
    %14 = math.erf %13 : vector<8x32xf32>
    %cst_15 = arith.constant 1.000000e+00 : f32
    %15 = vector.broadcast %cst_15 : f32 to vector<8x32xf32>
    %16 = arith.addf %15, %14 : vector<8x32xf32>
    %17 = arith.mulf %11, %16 : vector<8x32xf32>
    %cst_16 = arith.constant dense<0.000000e+00> : vector<8xf32>
    %18 = vector.multi_reduction <add>, %17, %cst_16 [1] : vector<8x32xf32> to vector<8xf32>
    %19 = vector.shape_cast %18 : vector<8xf32> to vector<8x1xf32>
    %cst_17 = arith.constant 3.125000e-02 : f32
    %20 = vector.broadcast %cst_17 : f32 to vector<8x1xf32>
    %21 = arith.mulf %19, %20 : vector<8x1xf32>
    %22 = vector.broadcast %21 : vector<8x1xf32> to vector<8x32xf32>
    %23 = arith.subf %17, %22 : vector<8x32xf32>
    %24 = arith.mulf %23, %23 : vector<8x32xf32>
    %cst_18 = arith.constant dense<0.000000e+00> : vector<8xf32>
    %25 = vector.multi_reduction <add>, %24, %cst_18 [1] : vector<8x32xf32> to vector<8xf32>
    %26 = vector.shape_cast %25 : vector<8xf32> to vector<8x1xf32>
    %cst_19 = arith.constant 3.125000e-02 : f32
    %27 = vector.broadcast %cst_19 : f32 to vector<8x1xf32>
    %28 = arith.mulf %26, %27 : vector<8x1xf32>
    %cst_20 = arith.constant 9.99999974E-6 : f32
    %29 = vector.broadcast %cst_20 : f32 to vector<8x1xf32>
    %30 = arith.addf %28, %29 : vector<8x1xf32>
    %31 = math.rsqrt %30 : vector<8x1xf32>
    %32 = vector.broadcast %31 : vector<8x1xf32> to vector<8x32xf32>
    %33 = arith.mulf %23, %32 : vector<8x32xf32>
    %34 = vector.broadcast %1 : vector<1x32xf32> to vector<8x32xf32>
    %35 = arith.mulf %33, %34 : vector<8x32xf32>
    %36 = vector.broadcast %2 : vector<1x32xf32> to vector<8x32xf32>
    %37 = arith.addf %35, %36 : vector<8x32xf32>
    %cst_21 = arith.constant dense<0.000000e+00> : vector<8x16xf32>
    %38 = tpu.matmul %37, %5, %cst_21 {dimension_numbers = #tpu.dot_dimension_numbers<[1], [0], [0], [1], [0, 0, 1, 1], [], []>} : vector<8x32xf32>, vector<32x16xf32>, vector<8x16xf32> -> vector<8x16xf32>
    %39 = vector.broadcast %3 : vector<1x16xf32> to vector<8x16xf32>
    %40 = arith.addf %38, %39 : vector<8x16xf32>
    %c0_22 = arith.constant 0 : index
    %c0_23 = arith.constant 0 : index
    %41 = vector.load %arg8[%c0_22, %c0_23] : memref<16x16xf32, #tpu.memory_space<vmem>>, vector<8x16xf32>
    tpu.vector_store %arg8[%c0_22, %c0_23], %40 {strides = array<i32>} : memref<16x16xf32, #tpu.memory_space<vmem>>, vector<8x16xf32>,
    %c8 = arith.constant 8 : index
    %c0_24 = arith.constant 0 : index
    %42 = vector.load %arg1[%c8, %c0_24] : memref<16x32xf32, #tpu.memory_space<vmem>>, vector<8x32xf32>
    %cst_25 = arith.constant dense<0.000000e+00> : vector<8x32xf32>
    %43 = tpu.matmul %42, %4, %cst_25 {dimension_numbers = #tpu.dot_dimension_numbers<[1], [0], [0], [1], [0, 0, 1, 1], [], []>} : vector<8x32xf32>, vector<32x32xf32>, vector<8x32xf32> -> vector<8x32xf32>
    %44 = vector.broadcast %0 : vector<1x32xf32> to vector<8x32xf32>
    %45 = arith.addf %43, %44 : vector<8x32xf32>
    %cst_26 = arith.constant 5.000000e-01 : f32
    %46 = vector.broadcast %cst_26 : f32 to vector<8x32xf32>
    %47 = arith.mulf %46, %45 : vector<8x32xf32>
    %cst_27 = arith.constant 0.707106769 : f32
    %48 = vector.broadcast %cst_27 : f32 to vector<8x32xf32>
    %49 = arith.mulf %45, %48 : vector<8x32xf32>
    %50 = math.erf %49 : vector<8x32xf32>
    %cst_28 = arith.constant 1.000000e+00 : f32
    %51 = vector.broadcast %cst_28 : f32 to vector<8x32xf32>
    %52 = arith.addf %51, %50 : vector<8x32xf32>
    %53 = arith.mulf %47, %52 : vector<8x32xf32>
    %cst_29 = arith.constant dense<0.000000e+00> : vector<8xf32>
    %54 = vector.multi_reduction <add>, %53, %cst_29 [1] : vector<8x32xf32> to vector<8xf32>
    %55 = vector.shape_cast %54 : vector<8xf32> to vector<8x1xf32>
    %cst_30 = arith.constant 3.125000e-02 : f32
    %56 = vector.broadcast %cst_30 : f32 to vector<8x1xf32>
    %57 = arith.mulf %55, %56 : vector<8x1xf32>
    %58 = vector.broadcast %57 : vector<8x1xf32> to vector<8x32xf32>
    %59 = arith.subf %53, %58 : vector<8x32xf32>
    %60 = arith.mulf %59, %59 : vector<8x32xf32>
    %cst_31 = arith.constant dense<0.000000e+00> : vector<8xf32>
    %61 = vector.multi_reduction <add>, %60, %cst_31 [1] : vector<8x32xf32> to vector<8xf32>
    %62 = vector.shape_cast %61 : vector<8xf32> to vector<8x1xf32>
    %cst_32 = arith.constant 3.125000e-02 : f32
    %63 = vector.broadcast %cst_32 : f32 to vector<8x1xf32>
    %64 = arith.mulf %62, %63 : vector<8x1xf32>
    %cst_33 = arith.constant 9.99999974E-6 : f32
    %65 = vector.broadcast %cst_33 : f32 to vector<8x1xf32>
    %66 = arith.addf %64, %65 : vector<8x1xf32>
    %67 = math.rsqrt %66 : vector<8x1xf32>
    %68 = vector.broadcast %67 : vector<8x1xf32> to vector<8x32xf32>
    %69 = arith.mulf %59, %68 : vector<8x32xf32>
    %70 = vector.broadcast %1 : vector<1x32xf32> to vector<8x32xf32>
    %71 = arith.mulf %69, %70 : vector<8x32xf32>
    %72 = vector.broadcast %2 : vector<1x32xf32> to vector<8x32xf32>
    %73 = arith.addf %71, %72 : vector<8x32xf32>
    %cst_34 = arith.constant dense<0.000000e+00> : vector<8x16xf32>
    %74 = tpu.matmul %73, %5, %cst_34 {dimension_numbers = #tpu.dot_dimension_numbers<[1], [0], [0], [1], [0, 0, 1, 1], [], []>} : vector<8x32xf32>, vector<32x16xf32>, vector<8x16xf32> -> vector<8x16xf32>
    %75 = vector.broadcast %3 : vector<1x16xf32> to vector<8x16xf32>
    %76 = arith.addf %74, %75 : vector<8x16xf32>
    %c8_35 = arith.constant 8 : index
    %c0_36 = arith.constant 0 : index
    %77 = vector.load %arg8[%c8_35, %c0_36] : memref<16x16xf32, #tpu.memory_space<vmem>>, vector<8x16xf32>
    tpu.vector_store %arg8[%c8_35, %c0_36], %76 {strides = array<i32>} : memref<16x16xf32, #tpu.memory_space<vmem>>, vector<8x16xf32>,
    return
  }
  func.func @transform_0(%arg0: i32) -> (i32, i32) {
    %c0_i32 = arith.constant 0 : i32
    %c0_i32_0 = arith.constant 0 : i32
    return %arg0, %c0_i32 : i32, i32
  }
  func.func @transform_1(%arg0: i32) -> (i32, i32) {
    %c0_i32 = arith.constant 0 : i32
    %c0_i32_0 = arith.constant 0 : i32
    %c0_i32_1 = arith.constant 0 : i32
    return %c0_i32, %c0_i32_0 : i32, i32
  }
  func.func @transform_2(%arg0: i32) -> (i32, i32) {
    %c0_i32 = arith.constant 0 : i32
    %c0_i32_0 = arith.constant 0 : i32
    %c0_i32_1 = arith.constant 0 : i32
    return %c0_i32, %c0_i32_0 : i32, i32
  }
  func.func @transform_3(%arg0: i32) -> (i32, i32) {
    %c0_i32 = arith.constant 0 : i32
    %c0_i32_0 = arith.constant 0 : i32
    %c0_i32_1 = arith.constant 0 : i32
    return %c0_i32, %c0_i32_0 : i32, i32
  }
  func.func @transform_4(%arg0: i32) -> (i32, i32) {
    %c0_i32 = arith.constant 0 : i32
    %c0_i32_0 = arith.constant 0 : i32
    %c0_i32_1 = arith.constant 0 : i32
    return %c0_i32, %c0_i32_0 : i32, i32
  }
  func.func @transform_5(%arg0: i32) -> (i32, i32) {
    %c0_i32 = arith.constant 0 : i32
    %c0_i32_0 = arith.constant 0 : i32
    %c0_i32_1 = arith.constant 0 : i32
    return %c0_i32, %c0_i32_0 : i32, i32
  }
  func.func @transform_6(%arg0: i32) -> (i32, i32) {
    %c0_i32 = arith.constant 0 : i32
    %c0_i32_0 = arith.constant 0 : i32
    %c0_i32_1 = arith.constant 0 : i32
    return %c0_i32, %c0_i32_0 : i32, i32
  }
  func.func @transform_7(%arg0: i32) -> (i32, i32) {
    %c0_i32 = arith.constant 0 : i32
    %c0_i32_0 = arith.constant 0 : i32
    return %arg0, %c0_i32 : i32, i32
  }
}

</mosaic_0001>

<bundles_post_ra>
// kernel: tpu_custom_call.1
= control target key start
LH: loop header
LB: loop body
LE: loop exit
PB: predicated region body
PF: predicated region fallthrough
CT: control target
= control target key end

     0   :  { %6 = vsyncpa [#allocation3], 0  ;;  %s481_s0 = inlined_call_operand.hbm [shape: f32[8,128], index: 0, kind: input, shape index: {}]   ;;  %s482_s1 = inlined_call_operand.hbm [shape: f32[16,128], index: 1, kind: output, shape index: {}]  }
   0x1   :  { %7 = vsyncpa [#allocation4], 0 }
   0x2   :  { %9 = vsyncpa [#allocation4 + $0x1], 0  ;;  %s351_s6 = smov 0   ;;  %s353_s7 = smov 0  }
   0x3   :  { %s355_s8 = smov 0   ;;  %s357_s9 = smov 0  }
   0x4 LB: > { %s372_s10 = sadd.s32 4294967295, %s337_s9   ;;  %s183_s11 = sadd.s32 4294967294, %s337_s9   ;;  %s337_s9 = sphi %s357_s9, %s498_s9   ;;  %s333_s8 = sphi %s355_s8, %s497_s8   ;;  %s329_s7 = sphi %s353_s7, %s496_s7   ;;  %s325_s6 = sphi %s351_s6, %s495_s6  }
   0x5   : > { %s376_s12 = sadd.s32 1, %s337_s9   ;;  %s43_s13 = sadd.s32 1, %s333_s8 }
   0x6   : > { %s40_s14 = ssub.s32 %s337_s9, %s376_s12  ;;  %p53_p0 = scmp.ne.s32.totalorder %s333_s8, %s329_s7 }
   0x7   : > { %p41_p1 = scmp.eq.s32.totalorder %s40_s14, 0  ;;  %p54_p2 = scmp.eq.s32.totalorder %s372_s10, 1 }
   0x8   : > { %p59_p3 = scmp.ne.s32.totalorder %s329_s7, %s325_s6  ;;  %p60_p4 = scmp.eq.s32.totalorder %s183_s11, 1 }
   0x9   : > { %s387_s15 = scalar_select %p41_p1, %s333_s8, %s43_s13  }
   0xa   : > { %p389_p5 = por %p54_p2, %p53_p0  ;;  %p393_p6 = por %p60_p4, %p59_p3 }
   0xb   : > { %p184_p7 = scmp.ge.s32.totalorder %s337_s9, 1  ;;  %p67_p8 = scmp.lt.s32.totalorder %s337_s9, 3 }
   0xc   : > { %s486_s16 = scalar_select %p389_p5, 1, 0 }
   0xd   : > { %s487_s17 = scalar_select %p393_p6, 1, 0 }
   0xe   : > { %p483_p9 = scmp.eq.s32.totalorder %s372_s10, 0  ;;  %p400_p10 = pnand %p184_p7, %p67_p8 }
   0xf   : > { %s339_s19 = smov [#allocation2]   ;;  %s243_s24 = scalar_lea.hbm %s481_s0, 128 }
  0x10   : > { %s488_s18 = scalar_select %p400_p10, 1, 0 }
  0x11   : > { %s80_s20 = sshll.u32 %s339_s19, 4  ;;  %p199_p11 = pneg %p400_p10  ;;  %s81_s20 = int_to_ptr.vmem [resolvable:$true] %s80_s20 }
  0x12   : > { %p244_p13 = scmp.ne.s32.totalorder %s481_s0, %s243_s24  ;;  %p250_p3 = scmp.lt.u32.totalorder %s243_s24, %s481_s0 }
  0x13   : > { %p408_p12 = pnand %p483_p9, %p199_p11 }
  0x15   : > { %p245_p0 = pneg %p408_p12 }
  0x17   : > { %p246_p1 = pnand %p245_p0, %p244_p13 }
  0x19   : > { %p247_p2 = pneg %p246_p1 }
  0x1b   : > { %p252_p4 = pnand %p250_p3, %p247_p2 }
  0x1d   : > { %255 = shalt.err (!%p252_p4)
}
  0x1e   : > { %s256_s29 = scalar_lea.vmem %s81_s20, 128  ;;  %p264_p9 = scmp.lt.s32.totalorder %s81_s20, %s81_s20 }
  0x1f   : > { %p257_p7 = scmp.ne.s32.totalorder %s81_s20, %s256_s29  ;;  %p265_p6 = scmp.lt.s32.totalorder %s256_s29, %s256_s29 }
  0x21   : > { %p259_p8 = pnand %p257_p7, %p245_p0  ;;  %p266_p5 = por %p265_p6, %p264_p9 }
  0x23   : > { %p260_p11 = pneg %p259_p8 }
  0x25   : > { %p267_p10 = pnand %p266_p5, %p260_p11 }
  0x27   : > { %270 = shalt.err (!%p267_p10)
}
  0x28   : > { %202 = dma.hbm_to_vmem [thread:$0]  (!%p408_p12), %s481_s0, 128, %s81_s20, [#allocation3]  }
  0x29   : > { %p490_p13 = scmp.ne.s32.totalorder %s488_s18, 0 }
  0x2a   : > { %p491_p1 = scmp.eq.s32.totalorder (!%p490_p13), %s372_s10, 0 }
  0x2b   : > { %93 = sbr.rel (%p490_p13) target bundleno = 77 (0x4d), region = 24 }
  0x32   : > { %316 = dma.done.wait (%p491_p1), [#allocation3], 128   ;;  %p492_p0 = pmov %p491_p1 }
  0x33   : > { %s105_s3 = sand.u32 1, %s329_s7   ;;  %s190_s13 = sshll.u32 %s372_s10, 7  ;;  %v108_v0 = vld [vmem:[#allocation2] sm:$0xff] }
  0x34   : > { %318 = vsyncadd (%p492_p0), [#allocation3], 4294967168  ;;  %s188_s4 = sshll.u32 %s105_s3, 3  ;;  %s441_s18 = scalar_lea.hbm %s482_s1, %s190_s13 }
  0x35   : > { %s107_s5 = scalar_lea.vmem [#allocation5], %s188_s4  ;;  %s111_s20 = scalar_lea.sflag [#allocation4], %s105_s3 }
  0x36   : > { %s124_s11 = sshll.u32 %s107_s5, 4  ;;  %109 = vst [vmem:[%s107_s5] sm:$0xff] %v108_v0  ;;  %p493_p6 = scmp.ne.s32.totalorder %s486_s16, 0  ;;  %s436_s11 = int_to_ptr.vmem [resolvable:$true] %s124_s11 }
  0x37   : > { %s271_s21 = scalar_lea.vmem %s436_s11, 128  ;;  %s340_s22 = smov [#allocation5]  }
  0x38   : > { %p272_p5 = scmp.ne.s32.totalorder %s436_s11, %s271_s21  ;;  %s275_s10 = sshll.u32 %s340_s22, 4  ;;  %s276_s10 = int_to_ptr.vmem [resolvable:$false] %s275_s10 }
  0x39   : > { %s277_s23 = scalar_lea.vmem %s276_s10, 256  ;;  %p278_p12 = scmp.lt.s32.totalorder %s436_s11, %s276_s10 }
  0x3a   : > { %p273_p9 = pnand %p272_p5, %p493_p6  ;;  %p279_p2 = scmp.lt.s32.totalorder %s277_s23, %s271_s21 }
  0x3c   : > { %p274_p10 = pneg %p273_p9  ;;  %p280_p3 = por %p279_p2, %p278_p12 }
  0x3e   : > { %p281_p4 = pnand %p280_p3, %p274_p10 }
  0x40   : > { %284 = shalt.err (!%p281_p4)
}
  0x41   : > { %s285_s24 = scalar_lea.hbm %s441_s18, 128  ;;  %s289_s27 = scalar_lea.hbm %s482_s1, 256 }
  0x42   : > { %p286_p7 = scmp.ne.s32.totalorder %s441_s18, %s285_s24  ;;  %p290_p13 = scmp.lt.u32.totalorder %s441_s18, %s482_s1 }
  0x43   : > { %p291_p1 = scmp.lt.u32.totalorder %s289_s27, %s285_s24  ;;  %p293_p5 = scmp.lt.u32.totalorder %s285_s24, %s441_s18 }
  0x44   : > { %p287_p8 = pnand %p286_p7, %p493_p6 }
  0x45   : > { %p292_p0 = por %p291_p1, %p290_p13 }
  0x46   : > { %p288_p11 = pneg %p287_p8 }
  0x47   : > { %p294_p9 = por %p293_p5, %p292_p0 }
  0x49   : > { %p295_p10 = pnand %p294_p9, %p288_p11 }
  0x4b   : > { %298 = shalt.err (!%p295_p10)
}
  0x4c   : > { %197 = dma.vmem_to_hbm [thread:$0]  (%p493_p6), %s436_s11, 128, %s441_s18, %s111_s20  }
  0x4d PF: > { %p209_p12 = scmp.ge.s32.totalorder %s337_s9, 2  ;;  %s136_s30 = sand.u32 1, %s325_s6  }
  0x4e   : > { %p494_p2 = scmp.ne.s32.totalorder %s487_s17, 0  ;;  %s137_s2 = scalar_lea.sflag [#allocation4], %s136_s30 }
  0x50   : > { %p204_p3 = pnand %p209_p12, %p494_p2 }
  0x52   : > { %320 = dma.done.wait (!%p204_p3), %s137_s2, 128  }
  0x53   : > { %322 = vsyncadd (!%p204_p3), %s137_s2, 4294967168  ;;  %p12_p4 = scmp.ge.s32.totalorder %s376_s12, 4   ;;  %s495_s6 = smov %s329_s7 }
  0x54   : > { %s496_s7 = smov %s333_s8  ;;  %s497_s8 = smov %s387_s15 }
  0x55   : > { %s498_s9 = smov %s376_s12  ;;  %14 = sbr.rel (!%p12_p4) target bundleno = 4 (0x4), region = 61 }
  0x5c   :  { %142 = vsyncpa [#allocation3], 1 }
  0x5d   :  { %144 = vsyncpa [#allocation3 + $0x1], 1 }
  0x5e   :  { %145 = vsyncpa [#allocation4], 1 }
  0x5f   :  { %147 = vsyncpa [#allocation4 + $0x1], 1 }

// kernel: _spec_rgs_head_jit.1
= control target key start
LH: loop header
LB: loop body
LE: loop exit
PB: predicated region body
PF: predicated region fallthrough
CT: control target
= control target key end

     0   :  { %v551_v3 = vmov 0.0|0.0   ;;  %vm552_vm0 = vmmov 0   ;;  %v553_v6 = vmov 0.0   ;;  %s675_s0 = inlined_call_operand.vmem [shape: f32[16,32], index: 0, kind: input, shape index: {}]   ;;  %s676_s1 = inlined_call_operand.vmem [shape: f32[32,32], index: 1, kind: input, shape index: {}]   ;;  %s677_s2 = inlined_call_operand.vmem [shape: f32[1,32], index: 2, kind: input, shape index: {}]   ;;  %s678_s3 = inlined_call_operand.vmem [shape: f32[1,32], index: 3, kind: input, shape index: {}]   ;;  %s679_s4 = inlined_call_operand.vmem [shape: f32[1,32], index: 4, kind: input, shape index: {}]   ;;  %s680_s5 = inlined_call_operand.vmem [shape: f32[32,16], index: 5, kind: input, shape index: {}]   ;;  %s681_s6 = inlined_call_operand.vmem [shape: f32[1,16], index: 6, kind: input, shape index: {}]   ;;  %s682_s7 = inlined_call_operand.hbm [shape: f32[16,16], index: 7, kind: output, shape index: {}]  }
   0x1   :  { %v31_v0 = vld [vmem:[%s676_s1] sm:$0xff]  ;;  %v32_v1 = vld [vmem:[%s676_s1 + $0x8] sm:$0xff]  ;;  %v33_v2 = vld [vmem:[%s676_s1 + $0x10] sm:$0xff]  ;;  %489 = vmatprep.subr.bf16.mxu0 %v551_v3  ;;  %453 = vmatprep.mubr.msk.f32.mxu0 %vm552_vm0, %v553_v6 }
   0x2   :  { %v490_v4 = vpack.c.bf16 %v32_v1, %v31_v0  ;;  %v34_v5 = vld [vmem:[%s676_s1 + $0x18] sm:$0xff]  ;;  %495 = vmatprep.subr.bf16.mxu1 %v551_v3  ;;  %464 = vmatprep.mubr.msk.f32.mxu1 %vm552_vm0, %v553_v6 }
   0x3   :  { %12 = vsyncpa [#allocation3], 0  ;;  %v493_v7 = vpack.c.bf16 %v34_v5, %v33_v2  ;;  %v39_v8 = vld [vmem:[%s675_s0] sm:$0xff]  ;;  %vm46_vm1 = vcmask 261120   ;;  %v233_v9 = vld [vmem:[%s675_s0 + $0x8] sm:$0xff]  ;;  %vm231_vm2 = vcmask 130048  }
   0x4   :  { %491 = vmatpush3.bf16.msra.mxu0 %v490_v4  ;;  %v417_v10 = vld [vmem:[%s677_s2] ss:$0 sm:$0xff]  ;;  %v36_v40 = vld [vmem:[%s680_s5 + $0x8] sm:$0xff]  ;;  %v37_v42 = vld [vmem:[%s680_s5 + $0x10] sm:$0xff] }
   0x5   :  { %492 = vmatprep.subr.bf16.mxu0 %v551_v3  ;;  %v35_v39 = vld [vmem:[%s680_s5] sm:$0xff]  ;;  %v38_v43 = vld [vmem:[%s680_s5 + $0x18] sm:$0xff] }
   0x6   :  { %v496_v41 = vpack.c.bf16 %v36_v40, %v35_v39  ;;  %v499_v44 = vpack.c.bf16 %v38_v43, %v37_v42  ;;  %v419_v52 = vld [vmem:[%s678_s3] ss:$0 sm:$0xff] }
   0x7   :  { %v420_v54 = vld [vmem:[%s679_s4] ss:$0 sm:$0xff]  ;;  %s554_s4 = smov [#allocation2]  }
   0x8   :  { %494 = vmatpush3.bf16.msra.mxu0 %v493_v7  ;;  %497 = vmatpush3.bf16.msra.mxu1 %v496_v41  ;;  %v421_v61 = vld [vmem:[%s681_s6] ss:$0 sm:$0xff]  ;;  %s406_s24 = sshll.u32 %s554_s4, 4  ;;  %s407_s24 = int_to_ptr.vmem [resolvable:$true] %s406_s24 }
   0x9   :  { %501 = vmatprep.subr.bf16.mxu0 %v551_v3  ;;  %498 = vmatprep.subr.bf16.mxu1 %v551_v3  ;;  %s527_s25 = scalar_lea.vmem %s407_s24, 256  ;;  %p532_p1 = scmp.lt.s32.totalorder %s407_s24, %s407_s24 }
   0xa   :  { %p528_p0 = scmp.ne.s32.totalorder %s407_s24, %s527_s25  ;;  %p533_p2 = scmp.lt.s32.totalorder %s527_s25, %s527_s25 }
   0xb   :  { %454 = vmatmul.mubr.msk.f32.vlgmr.msra.gmra.mrb[0].mxu0 %vm46_vm1, %v39_v8 }
   0xc   :  { %503 = vmatpush3.bf16.msra.mxu0 %v490_v4  ;;  %475 = vmatprep.mubr.msk.f32.mxu0 %vm552_vm0, %v553_v6  ;;  %p534_p3 = por %p533_p2, %p532_p1 }
   0xd   :  { %504 = vmatprep.subr.bf16.mxu0 %v551_v3  ;;  %500 = vmatpush3.bf16.msra.mxu1 %v499_v44 }
   0xe   :  { %507 = vmatprep.subr.bf16.mxu1 %v551_v3  ;;  %p535_p4 = pnand %p534_p3, %p528_p0 }
  0x10   :  { %506 = vmatpush3.bf16.msra.mxu0 %v493_v7 }
  0x13   :  { %476 = vmatmul.mubr.msk.f32.vlgmr.msra.gmra.mrb[2].mxu0 %vm46_vm1, %v233_v9 }
  0xde   :  { %v116_v11 = vpop.f32.mrb[0].mxu0 }
  0xdf   :  { %v117_v12 = vadd.f32 %v417_v10, %v116_v11  ;;  %v455_v13 = vpop.f32.mrb[1].mxu0 }
  0xe1   :  { %v121_v14 = vmul.f32 0.70710677, %v117_v12  ;;  %v120_v20 = vmul.f32 0.5, %v117_v12 }
  0xe3   :  { %519 = verf.f32 %v121_v14 }
  0xe6   :  { %v303_v15 = vpop.f32.mrb[2].mxu0 }
  0xe7   :  { %v304_v16 = vadd.f32 %v417_v10, %v303_v15  ;;  %v477_v17 = vpop.f32.mrb[3].mxu0 }
  0xe9   :  { %v308_v18 = vmul.f32 0.70710677, %v304_v16  ;;  %v307_v25 = vmul.f32 0.5, %v304_v16 }
  0xeb   :  { %521 = verf.f32 %v308_v18 }
  0xed   :  { %v520_v19 = vpop.eup %519 }
  0xee   :  { %v123_v21 = vadd.f32 1.0, %v520_v19 }
  0xf0   :  { %v124_v22 = vmul.f32 %v123_v21, %v120_v20 }
  0xf2   :  { %v125_v23 = vsel %vm46_vm1, %v124_v22, 0.0 }
  0xf3   :  { %126 = vadd.xlane.f32.xlu0 %v125_v23 }
  0xf5   :  { %v522_v24 = vpop.eup %521 }
  0xf6   :  { %v310_v26 = vadd.f32 1.0, %v522_v24 }
  0xf8   :  { %v311_v27 = vmul.f32 %v310_v26, %v307_v25 }
  0xfa   :  { %v312_v28 = vsel %vm46_vm1, %v311_v27, 0.0 }
  0xfb   :  { %313 = vadd.xlane.f32.xlu0 %v312_v28 }
 0x180   :  { %v127_v29 = vpop.xlane.xlu0 %126 }
 0x181   :  { %v128_v30 = vmul.f32 0.03125, %v127_v29 }
 0x183   :  { %v129_v31 = vsub.f32 %v124_v22, %v128_v30 }
 0x185   :  { %v130_v32 = vmul.f32 %v129_v31, %v129_v31 }
 0x187   :  { %v131_v33 = vsel %vm46_vm1, %v130_v32, 0.0 }
 0x188   :  { %132 = vadd.xlane.f32.xlu1 %v131_v33  ;;  %v314_v34 = vpop.xlane.xlu0 %313 }
 0x189   :  { %v315_v35 = vmul.f32 0.03125, %v314_v34 }
 0x18b   :  { %v316_v36 = vsub.f32 %v311_v27, %v315_v35 }
 0x18d   :  { %v317_v37 = vmul.f32 %v316_v36, %v316_v36 }
 0x18f   :  { %v318_v38 = vsel %vm46_vm1, %v317_v37, 0.0 }
 0x190   :  { %319 = vadd.xlane.f32.xlu1 %v318_v38 }
 0x215   :  { %v133_v45 = vpop.xlane.xlu1 %132 }
 0x216   :  { %v134_v46 = vmul.f32 0.03125, %v133_v45 }
 0x218   :  { %v135_v47 = vadd.f32 1e-05, %v134_v46 }
 0x21a   :  { %523 = vrsqrt.f32 %v135_v47 }
 0x21d   :  { %v320_v48 = vpop.xlane.xlu1 %319 }
 0x21e   :  { %v321_v49 = vmul.f32 0.03125, %v320_v48 }
 0x220   :  { %v322_v50 = vadd.f32 1e-05, %v321_v49 }
 0x222   :  { %525 = vrsqrt.f32 %v322_v50 }
 0x224   :  { %v524_v51 = vpop.eup %523 }
 0x225   :  { %v137_v53 = vmul.f32 %v524_v51, %v129_v31 }
 0x227   :  { %v144_v55 = vmul.f32 %v419_v52, %v137_v53 }
 0x229   :  { %v151_v56 = vadd.f32 %v420_v54, %v144_v55 }
 0x22b   :  { %465 = vmatmul.mubr.msk.f32.vlgmr.msra.gmra.mrb[0].mxu1 %vm46_vm1, %v151_v56 }
 0x22c   :  { %v526_v57 = vpop.eup %525  ;;  %509 = vmatpush3.bf16.msra.mxu1 %v496_v41  ;;  %486 = vmatprep.mubr.msk.f32.mxu1 %vm552_vm0, %v553_v6 }
 0x22d   :  { %v324_v58 = vmul.f32 %v526_v57, %v316_v36  ;;  %510 = vmatprep.subr.bf16.mxu1 %v551_v3 }
 0x22f   :  { %v325_v59 = vmul.f32 %v419_v52, %v324_v58 }
 0x230   :  { %512 = vmatpush3.bf16.msra.mxu1 %v499_v44 }
 0x231   :  { %v326_v60 = vadd.f32 %v420_v54, %v325_v59 }
 0x233   :  { %487 = vmatmul.mubr.msk.f32.vlgmr.msra.gmra.mrb[2].mxu1 %vm46_vm1, %v326_v60 }
 0x2fe   :  { %v227_v62 = vpop.f32.mrb[0].mxu1 }
 0x2ff   :  { %v228_v63 = vadd.f32 %v421_v61, %v227_v62  ;;  %v466_v0 = vpop.f32.mrb[1].mxu1 }
 0x301   :  { %232 = vst.msk [vmem:[#allocation2] sm:$0xff] %vm231_vm2, %v228_v63 }
 0x306   :  { %v396_v1 = vpop.f32.mrb[2].mxu1 }
 0x307   :  { %v397_v2 = vadd.f32 %v421_v61, %v396_v1  ;;  %v488_v3 = vpop.f32.mrb[3].mxu1 }
 0x309   :  { %400 = vst.msk [vmem:[#allocation2 + $0x8] sm:$0xff] %vm231_vm2, %v397_v2 }
 0x30a   :  { %538 = shalt.err (!%p535_p4)
}
 0x30b   :  { %s539_s27 = scalar_lea.hbm %s682_s7, 256 }
 0x30c   :  { %p540_p5 = scmp.ne.s32.totalorder %s682_s7, %s539_s27  ;;  %p543_p6 = scmp.lt.u32.totalorder %s539_s27, %s682_s7 }
 0x30e   :  { %p545_p7 = pnand %p543_p6, %p540_p5 }
 0x310   :  { %548 = shalt.err (!%p545_p7)
}
 0x311   :  { %s555_s9 = smov 128   ;;  %s556_s10 = smov 8  }
 0x312   :  { %412 = dma.vmem_to_hbm [thread:$0]  %s407_s24, 256, %s682_s7, [#allocation3], %s555_s9, %s555_s9, %s556_s10  }
 0x313   :  { %549 = dma.done.wait [#allocation3], 256  }
 0x314   :  { %550 = vsyncadd [#allocation3], 4294967040 }
 0x315   :  { %416 = vsyncpa [#allocation3], 1 }

</bundles_post_ra>
